<compile_context>
chip_gen: v5e
topology: v5e:2x2
jax: 0.10.0
libtpu: 0.0.40
codegen_flags: <defaults>
</compile_context>

<pallas_src>
import math
import functools

import jax
import jax.numpy as jnp
from jax import lax
from jax.experimental import pallas as pl
from jax.experimental.pallas import tpu as pltpu


# --------------------------- kernel 1: K / K_pos / V projection ---------------------------
def _kv_proj_kernel(hs_ref, pos_ref, pm_ref, wkv_ref, bkv_ref, wk_ref, bk_ref,
                    k_ref, kp_ref, v_ref, *, hidden, inv_sqrt_d):
    x = hs_ref[0]                                        # (sb, H) bf16
    p = pos_ref[0]                                       # (sb, H) bf16
    kv = jnp.dot(x, wkv_ref[...], preferred_element_type=jnp.float32) + bkv_ref[...]   # (sb, 2H)
    kp = jnp.dot(p, wk_ref[...], preferred_element_type=jnp.float32) + bk_ref[...]     # (sb, H)
    pm_k = 1.0 - pm_ref[0]                               # (sb, 1) key-side (1 - mask)
    k_ref[0] = (kv[:, :hidden] * inv_sqrt_d).astype(k_ref.dtype)
    v_ref[0] = kv[:, hidden:].astype(v_ref.dtype)
    kp_ref[0] = (kp * (inv_sqrt_d * pm_k)).astype(kp_ref.dtype)


# ---------------- kernel 2: attention + output projection + residual + LayerNorm ----------------
def _attention_kernel(xq_ref, posq_ref, pmq_ref, amask_ref,
                      k_ref, kp_ref, v_ref,
                      wq_ref, bq_ref, wo_ref, bo_ref, gamma_ref, beta_ref,
                      out_ref, ctx_scr,
                      *, num_heads, head_dim, q_block, seq_len, eps):
    x_q = xq_ref[0]                                      # (tq, H) f32 (residual path only)
    wq = wq_ref[...]
    bq = bq_ref[...]
    q = jnp.dot(x_q.astype(jnp.bfloat16), wq, preferred_element_type=jnp.float32) + bq
    qpos = jnp.dot(posq_ref[0], wq, preferred_element_type=jnp.float32) + bq

    pm_q = 1.0 - pmq_ref[0]                              # (tq, 1) query-side (1 - mask)
    qm = (q + 1.0) * qpos * pm_q                         # rank-1 bbox mask folded (query side)
    am_b = jnp.broadcast_to(amask_ref[...], (q_block, seq_len))   # hoisted out of head loop

    k_all = k_ref[0]                                     # (S, H) bf16, already * 1/sqrt(d)
    kp_all = kp_ref[0]                                   # (S, H) bf16, * 1/sqrt(d) * (1-pm_k)
    v_all = v_ref[0]                                     # (S, H) bf16

    dims = (((1,), (1,)), ((), ()))                      # contract last dims: (tq,2d)x(S,2d)->(tq,S)

    for h in range(num_heads):                           # statically unrolled (small head counts)
        sl = slice(h * head_dim, (h + 1) * head_dim)
        # one fused score matmul contracting 2*head_dim (scores + masked positional scores)
        q2 = jnp.concatenate([q[:, sl], qm[:, sl]], axis=-1).astype(jnp.bfloat16)   # (tq, 2d)
        k2 = jnp.concatenate([k_all[:, sl], kp_all[:, sl]], axis=-1)                # (S, 2d)
        s = lax.dot_general(q2, k2, dims, preferred_element_type=jnp.float32) + am_b
        s = s - jnp.max(s, axis=-1, keepdims=True)
        e = jnp.exp(s)
        probs = e * pl.reciprocal(jnp.sum(e, axis=-1, keepdims=True), approx=True)
        ctx_scr[:, sl] = jnp.dot(probs.astype(jnp.bfloat16), v_all[:, sl],
                                 preferred_element_type=jnp.float32)

    # output dense + residual + LayerNorm (f32)
    y = jnp.dot(ctx_scr[...].astype(jnp.bfloat16), wo_ref[...],
                preferred_element_type=jnp.float32) + bo_ref[...]
    y = y + x_q
    mean = jnp.mean(y, axis=-1, keepdims=True)
    var = jnp.mean((y - mean) ** 2, axis=-1, keepdims=True)
    y = (y - mean) * lax.rsqrt(var + eps)
    out_ref[0] = (y * gamma_ref[...] + beta_ref[...]).astype(out_ref.dtype)


def _vmem_ceiling():
    cap = 128 * 1024 * 1024
    try:
        info = pltpu.get_tpu_info()
        cap = int(getattr(info, "vmem_capacity_bytes", cap) or cap)
    except Exception:
        pass
    return int(cap * 0.85)        # leave headroom for Mosaic internal scratch


def layout_roberta_attention(hidden_states, bbox_pos_emb, bbox_pos_mask,
                             attention_mask, params, *, num_heads,
                             q_block=None, s_block=None, eps=1e-12):
    B, S, H = hidden_states.shape
    assert H % num_heads == 0
    head_dim = H // num_heads
    inv_sqrt_d = 1.0 / math.sqrt(head_dim)

    ceiling = _vmem_ceiling()

    def attn_vmem_est(qb):
        return (2 * qb * H * 4            # f32 hidden tile (double-buffered)
                + 2 * qb * H * 2          # bf16 pos tile
                + 2 * 3 * S * H * 2       # K / K_pos / V bf16 blocks (double-buffered)
                + 2 * 2 * H * H * 2       # Wq / Wo bf16 (double-buffered)
                + 2 * qb * H * 4          # output tile
                + qb * H * 4              # ctx scratch
                + 8 * qb * S * 4          # score / softmax temporaries
                + (4 << 20))              # slack

    # generation-aware default query tile: 256, dropping to 128 when the estimated
    # footprint would crowd a small-VMEM part (e.g. v7x, 64 MiB physical).
    if q_block is None:
        q_block = min(S, 256)
        if q_block > 128 and S % 128 == 0 and attn_vmem_est(q_block) > int(0.75 * ceiling):
            q_block = 128
    assert S % q_block == 0, "sequence length must be a multiple of the query tile"
    num_q = S // q_block

    if s_block is None:
        s_block = min(S, 256)
    assert S % s_block == 0, "sequence length must be a multiple of the projection tile"
    num_s = S // s_block

    # ---- wrapper-side layout plumbing (one transpose+cast pass, no compute hoisting) ----
    hs_f32 = hidden_states.astype(jnp.float32)
    hs_bf16 = hidden_states.astype(jnp.bfloat16)
    pos_bsh = jnp.transpose(bbox_pos_emb, (1, 0, 2)).astype(jnp.bfloat16)   # (S,B,H) -> (B,S,H) bf16
    pmask_col = bbox_pos_mask.astype(jnp.float32)[:, :, None]               # (B, S, 1)
    amask = attention_mask.astype(jnp.float32)                              # (B, S) additive

    wq = params['wq'].astype(jnp.bfloat16)
    wk = params['wk'].astype(jnp.bfloat16)
    wv = params['wv'].astype(jnp.bfloat16)
    wo = params['wo'].astype(jnp.bfloat16)
    wkv = jnp.concatenate([wk, wv], axis=1)                                  # (H, 2H) bf16
    bkv = jnp.concatenate([params['bk'], params['bv']], axis=1)              # (1, 2H) f32

    # ---------------- kernel 1: K / K_pos / V projection ----------------
    proj_est = (4 * s_block * H * 2 + 12 * H * H + 6 * s_block * H * 2
                + 4 * s_block * H * 4 + (4 << 20))
    proj_vmem = int(min(ceiling, max(16 << 20, proj_est)))
    proj_cost = pl.CostEstimate(flops=6 * B * S * H * H, transcendentals=0,
                                bytes_accessed=10 * B * S * H + 6 * H * H + 4 * B * S)

    k_all, kp_all, v_all = pl.pallas_call(
        functools.partial(_kv_proj_kernel, hidden=H, inv_sqrt_d=inv_sqrt_d),
        out_shape=(jax.ShapeDtypeStruct((B, S, H), jnp.bfloat16),
                   jax.ShapeDtypeStruct((B, S, H), jnp.bfloat16),
                   jax.ShapeDtypeStruct((B, S, H), jnp.bfloat16)),
        grid=(B, num_s),
        in_specs=[
            pl.BlockSpec((1, s_block, H), lambda b, st: (b, st, 0)),   # hidden (bf16)
            pl.BlockSpec((1, s_block, H), lambda b, st: (b, st, 0)),   # bbox pos emb (bf16)
            pl.BlockSpec((1, s_block, 1), lambda b, st: (b, st, 0)),   # bbox mask (key side)
            pl.BlockSpec((H, 2 * H), lambda b, st: (0, 0)),            # [Wk | Wv]
            pl.BlockSpec((1, 2 * H), lambda b, st: (0, 0)),            # [bk | bv]
            pl.BlockSpec((H, H), lambda b, st: (0, 0)),                # Wk
            pl.BlockSpec((1, H), lambda b, st: (0, 0)),                # bk
        ],
        out_specs=(
            pl.BlockSpec((1, s_block, H), lambda b, st: (b, st, 0)),
            pl.BlockSpec((1, s_block, H), lambda b, st: (b, st, 0)),
            pl.BlockSpec((1, s_block, H), lambda b, st: (b, st, 0)),
        ),
        compiler_params=pltpu.CompilerParams(
            dimension_semantics=("parallel", "parallel"),
            vmem_limit_bytes=proj_vmem),
        cost_estimate=proj_cost,
    )(hs_bf16, pos_bsh, pmask_col, wkv, bkv, wk, params['bk'])

    # ---------------- kernel 2: attention + output projection + LayerNorm ----------------
    attn_vmem = int(min(ceiling, max(16 << 20, attn_vmem_est(q_block))))
    attn_cost = pl.CostEstimate(
        flops=6 * B * S * S * H + 6 * B * S * H * H,
        transcendentals=B * num_heads * S * S,
        bytes_accessed=16 * B * S * H + 4 * H * H)

    kernel = functools.partial(_attention_kernel, num_heads=num_heads, head_dim=head_dim,
                               q_block=q_block, seq_len=S, eps=eps)

    def const2d(shape):
        return pl.BlockSpec(shape, lambda b, qt: (0, 0))

    return pl.pallas_call(
        kernel,
        out_shape=jax.ShapeDtypeStruct((B, S, H), jnp.float32),
        grid=(B, num_q),
        in_specs=[
            pl.BlockSpec((1, q_block, H), lambda b, qt: (b, qt, 0)),   # hidden tile (f32: residual + Q)
            pl.BlockSpec((1, q_block, H), lambda b, qt: (b, qt, 0)),   # pos tile (bf16: Q_pos)
            pl.BlockSpec((1, q_block, 1), lambda b, qt: (b, qt, 0)),   # bbox mask (query side)
            pl.BlockSpec((1, S), lambda b, qt: (b, 0)),                # additive attention mask
            pl.BlockSpec((1, S, H), lambda b, qt: (b, 0, 0)),          # K   (pre-scaled)
            pl.BlockSpec((1, S, H), lambda b, qt: (b, 0, 0)),          # K_pos (pre-scaled, masked)
            pl.BlockSpec((1, S, H), lambda b, qt: (b, 0, 0)),          # V
            const2d((H, H)), const2d((1, H)),                          # Wq, bq
            const2d((H, H)), const2d((1, H)),                          # Wo, bo
            const2d((1, H)), const2d((1, H)),                          # LayerNorm gamma, beta
        ],
        out_specs=pl.BlockSpec((1, q_block, H), lambda b, qt: (b, qt, 0)),
        scratch_shapes=[pltpu.VMEM((q_block, H), jnp.float32)],        # per-tile context accumulator
        compiler_params=pltpu.CompilerParams(
            # no cross-step scratch dependency any more -> both axes parallel (v7x 2-TC sharding)
            dimension_semantics=("parallel", "parallel"),
            vmem_limit_bytes=attn_vmem),
        cost_estimate=attn_cost,
    )(hs_f32, pos_bsh, pmask_col, amask,
      k_all, kp_all, v_all,
      wq, params['bq'], wo, params['bo'], params['gamma'], params['beta'])


def _reference(hs, pos, pmask, amask, p, num_heads, eps=1e-12):
    """Pure-JAX (f32) mirror of the PyTorch forward for validation."""
    B, S, H = hs.shape
    dH = H // num_heads

    def lin(x, w, b):
        return x @ w + b[0]

    q = lin(hs, p['wq'], p['bq'])
    k = lin(hs, p['wk'], p['bk'])
    v = lin(hs, p['wv'], p['bv'])

    def heads(x):
        return x.reshape(B, S, num_heads, dH).transpose(0, 2, 1, 3)

    Q, K, V = heads(q), heads(k), heads(v)
    scores = jnp.einsum('bhid,bhjd->bhij', Q, K)

    qpos = lin(pos, p['wq'], p['bq']).reshape(S, B, num_heads, dH).transpose(1, 2, 0, 3)
    kpos = lin(pos, p['wk'], p['bk']).reshape(S, B, num_heads, dH).transpose(1, 2, 0, 3)
    pos1 = jnp.einsum('bnid,bnjd->bnij', Q * qpos, kpos)
    pos2 = jnp.einsum('bnid,bnjd->bnij', qpos, kpos)
    pm = 1.0 - pmask
    pm2 = pm[:, :, None] * pm[:, None, :]
    pos_scores = (pos1 + pos2) * pm2[:, None]

    scores = (scores + pos_scores) / math.sqrt(dH) + amask[:, None, None, :]
    probs = jax.nn.softmax(scores, axis=-1)
    ctx = jnp.einsum('bhij,bhjd->bhid', probs, V).transpose(0, 2, 1, 3).reshape(B, S, H)

    y = ctx @ p['wo'] + p['bo'][0] + hs
    mean = y.mean(-1, keepdims=True)
    var = ((y - mean) ** 2).mean(-1, keepdims=True)
    y = (y - mean) / jnp.sqrt(var + eps)
    return y * p['gamma'][0] + p['beta'][0]


if __name__ == "__main__":
    # 2 query tiles of 16 -> exercises the tiled attention path and the split projection kernel.
    B, S, H, NH = 2, 32, 32, 4

    key = jax.random.PRNGKey(0)
    keys = jax.random.split(key, 16)

    def w(k):
        return (0.02 * jax.random.normal(k, (H, H))).astype(jnp.float32)

    def b(k):
        return (0.02 * jax.random.normal(k, (1, H))).astype(jnp.float32)

    params = {
        'wq': w(keys[0]), 'bq': b(keys[1]),
        'wk': w(keys[2]), 'bk': b(keys[3]),
        'wv': w(keys[4]), 'bv': b(keys[5]),
        'wo': w(keys[6]), 'bo': b(keys[7]),
        'gamma': jnp.ones((1, H), jnp.float32),
        'beta': jnp.zeros((1, H), jnp.float32),
    }

    hidden_states = jax.random.normal(keys[8], (B, S, H), jnp.float32)
    bbox_pos_emb = jax.random.normal(keys[9], (S, B, H), jnp.float32)
    # binary bbox mask (1 = masked in the PyTorch convention; module does 1 - mask)
    bbox_pos_mask = jax.random.bernoulli(keys[10], 0.2, (B, S)).astype(jnp.float32)
    # additive attention mask: 0 for attended tokens, -1e4 for padded ones
    keep = jax.random.bernoulli(keys[11], 0.9, (B, S)).astype(jnp.float32)
    attention_mask = (1.0 - keep) * -10000.0

    out = layout_roberta_attention(hidden_states, bbox_pos_emb, bbox_pos_mask,
                                   attention_mask, params, num_heads=NH, q_block=16)
    out = jax.block_until_ready(out)

    ref = _reference(hidden_states, bbox_pos_emb, bbox_pos_mask,
                     attention_mask, params, NH)
    assert out.shape == (B, S, H)
    # bf16 MXU operands + approx reciprocal in the kernel vs. full-f32 reference
    assert jnp.allclose(out, ref, rtol=2e-2, atol=2e-2), "mismatch vs reference"
    print("KERNEL_OK")
</pallas_src>

<mosaic_0001>
module attributes {stable_mosaic.version = 11 : i64} {
  func.func @_kv_proj_kernel(%arg0: i32, %arg1: i32, %arg2: memref<1x32x32xbf16, #tpu.memory_space<vmem>>, %arg3: memref<1x32x32xbf16, #tpu.memory_space<vmem>>, %arg4: memref<1x32x1xf32, #tpu.memory_space<vmem>>, %arg5: memref<32x64xbf16, #tpu.memory_space<vmem>>, %arg6: memref<1x64xf32, #tpu.memory_space<vmem>>, %arg7: memref<32x32xbf16, #tpu.memory_space<vmem>>, %arg8: memref<1x32xf32, #tpu.memory_space<vmem>>, %arg9: memref<1x32x32xbf16, #tpu.memory_space<vmem>>, %arg10: memref<1x32x32xbf16, #tpu.memory_space<vmem>>, %arg11: memref<1x32x32xbf16, #tpu.memory_space<vmem>>) attributes {dimension_semantics = [#tpu.dimension_semantics<parallel>, #tpu.dimension_semantics<parallel>], iteration_bounds = array<i64: 2, 1>, scalar_prefetch = 0 : i64, scratch_operands = 0 : i64, tpu.core_type = #tpu.core_type<tc>, window_params = [{transform_indices = @transform_0, window_bounds = array<i64: 1, 32, 32>}, {transform_indices = @transform_1, window_bounds = array<i64: 1, 32, 32>}, {transform_indices = @transform_2, window_bounds = array<i64: 1, 32, 1>}, {pipeline_mode = #tpu.pipeline_mode<synchronous>, transform_indices = @transform_3, window_bounds = array<i64: 32, 64>}, {pipeline_mode = #tpu.pipeline_mode<synchronous>, transform_indices = @transform_4, window_bounds = array<i64: 1, 64>}, {pipeline_mode = #tpu.pipeline_mode<synchronous>, transform_indices = @transform_5, window_bounds = array<i64: 32, 32>}, {pipeline_mode = #tpu.pipeline_mode<synchronous>, transform_indices = @transform_6, window_bounds = array<i64: 1, 32>}, {transform_indices = @transform_7, window_bounds = array<i64: 1, 32, 32>}, {transform_indices = @transform_8, window_bounds = array<i64: 1, 32, 32>}, {transform_indices = @transform_9, window_bounds = array<i64: 1, 32, 32>}]} {
    %c0 = arith.constant 0 : index
    %c0_0 = arith.constant 0 : index
    %c0_1 = arith.constant 0 : index
    %0 = vector.load %arg2[%c0, %c0_0, %c0_1] : memref<1x32x32xbf16, #tpu.memory_space<vmem>>, vector<1x32x32xbf16>
    %1 = vector.shape_cast %0 : vector<1x32x32xbf16> to vector<32x32xbf16>
    %c0_2 = arith.constant 0 : index
    %c0_3 = arith.constant 0 : index
    %c0_4 = arith.constant 0 : index
    %2 = vector.load %arg3[%c0_2, %c0_3, %c0_4] : memref<1x32x32xbf16, #tpu.memory_space<vmem>>, vector<1x32x32xbf16>
    %3 = vector.shape_cast %2 : vector<1x32x32xbf16> to vector<32x32xbf16>
    %c0_5 = arith.constant 0 : index
    %c0_6 = arith.constant 0 : index
    %4 = vector.load %arg5[%c0_5, %c0_6] : memref<32x64xbf16, #tpu.memory_space<vmem>>, vector<32x64xbf16>
    %cst = arith.constant dense<0.000000e+00> : vector<32x64xf32>
    %5 = tpu.matmul %1, %4, %cst {dimension_numbers = #tpu.dot_dimension_numbers<[1], [0], [0], [1], [0, 0, 1, 1], [], []>} : vector<32x32xbf16>, vector<32x64xbf16>, vector<32x64xf32> -> vector<32x64xf32>
    %c0_7 = arith.constant 0 : index
    %c0_8 = arith.constant 0 : index
    %6 = vector.load %arg6[%c0_7, %c0_8] : memref<1x64xf32, #tpu.memory_space<vmem>>, vector<1x64xf32>
    %7 = vector.broadcast %6 : vector<1x64xf32> to vector<32x64xf32>
    %8 = arith.addf %5, %7 : vector<32x64xf32>
    %c0_9 = arith.constant 0 : index
    %c0_10 = arith.constant 0 : index
    %9 = vector.load %arg7[%c0_9, %c0_10] : memref<32x32xbf16, #tpu.memory_space<vmem>>, vector<32x32xbf16>
    %cst_11 = arith.constant dense<0.000000e+00> : vector<32x32xf32>
    %10 = tpu.matmul %3, %9, %cst_11 {dimension_numbers = #tpu.dot_dimension_numbers<[1], [0], [0], [1], [0, 0, 1, 1], [], []>} : vector<32x32xbf16>, vector<32x32xbf16>, vector<32x32xf32> -> vector<32x32xf32>
    %c0_12 = arith.constant 0 : index
    %c0_13 = arith.constant 0 : index
    %11 = vector.load %arg8[%c0_12, %c0_13] : memref<1x32xf32, #tpu.memory_space<vmem>>, vector<1x32xf32>
    %12 = vector.broadcast %11 : vector<1x32xf32> to vector<32x32xf32>
    %13 = arith.addf %10, %12 : vector<32x32xf32>
    %c0_14 = arith.constant 0 : index
    %c0_15 = arith.constant 0 : index
    %c0_16 = arith.constant 0 : index
    %14 = vector.load %arg4[%c0_14, %c0_15, %c0_16] : memref<1x32x1xf32, #tpu.memory_space<vmem>>, vector<1x32x1xf32>
    %15 = vector.shape_cast %14 : vector<1x32x1xf32> to vector<32x1xf32>
    %cst_17 = arith.constant 1.000000e+00 : f32
    %16 = vector.broadcast %cst_17 : f32 to vector<32x1xf32>
    %17 = arith.subf %16, %15 : vector<32x1xf32>
    %18 = vector.extract_strided_slice %8 {offsets = [0, 0], sizes = [32, 32], strides = [1, 1]} : vector<32x64xf32> to vector<32x32xf32>
    %cst_18 = arith.constant 0.353553385 : f32
    %19 = vector.broadcast %cst_18 : f32 to vector<32x32xf32>
    %20 = arith.mulf %18, %19 : vector<32x32xf32>
    %21 = arith.truncf %20 : vector<32x32xf32> to vector<32x32xbf16>
    %c0_19 = arith.constant 0 : index
    %c0_20 = arith.constant 0 : index
    %c0_21 = arith.constant 0 : index
    %22 = vector.load %arg9[%c0_19, %c0_20, %c0_21] : memref<1x32x32xbf16, #tpu.memory_space<vmem>>, vector<1x32x32xbf16>
    %23 = vector.shape_cast %22 : vector<1x32x32xbf16> to vector<32x32xbf16>
    %24 = vector.shape_cast %21 : vector<32x32xbf16> to vector<1x32x32xbf16>
    tpu.vector_store %arg9[%c0_19, %c0_20, %c0_21], %24 {strides = array<i32>} : memref<1x32x32xbf16, #tpu.memory_space<vmem>>, vector<1x32x32xbf16>,
    %25 = vector.extract_strided_slice %8 {offsets = [0, 32], sizes = [32, 32], strides = [1, 1]} : vector<32x64xf32> to vector<32x32xf32>
    %26 = arith.truncf %25 : vector<32x32xf32> to vector<32x32xbf16>
    %c0_22 = arith.constant 0 : index
    %c0_23 = arith.constant 0 : index
    %c0_24 = arith.constant 0 : index
    %27 = vector.load %arg11[%c0_22, %c0_23, %c0_24] : memref<1x32x32xbf16, #tpu.memory_space<vmem>>, vector<1x32x32xbf16>
    %28 = vector.shape_cast %27 : vector<1x32x32xbf16> to vector<32x32xbf16>
    %29 = vector.shape_cast %26 : vector<32x32xbf16> to vector<1x32x32xbf16>
    tpu.vector_store %arg11[%c0_22, %c0_23, %c0_24], %29 {strides = array<i32>} : memref<1x32x32xbf16, #tpu.memory_space<vmem>>, vector<1x32x32xbf16>,
    %cst_25 = arith.constant 0.353553385 : f32
    %30 = vector.broadcast %cst_25 : f32 to vector<32x1xf32>
    %31 = arith.mulf %30, %17 : vector<32x1xf32>
    %32 = vector.broadcast %31 : vector<32x1xf32> to vector<32x32xf32>
    %33 = arith.mulf %13, %32 : vector<32x32xf32>
    %34 = arith.truncf %33 : vector<32x32xf32> to vector<32x32xbf16>
    %c0_26 = arith.constant 0 : index
    %c0_27 = arith.constant 0 : index
    %c0_28 = arith.constant 0 : index
    %35 = vector.load %arg10[%c0_26, %c0_27, %c0_28] : memref<1x32x32xbf16, #tpu.memory_space<vmem>>, vector<1x32x32xbf16>
    %36 = vector.shape_cast %35 : vector<1x32x32xbf16> to vector<32x32xbf16>
    %37 = vector.shape_cast %34 : vector<32x32xbf16> to vector<1x32x32xbf16>
    tpu.vector_store %arg10[%c0_26, %c0_27, %c0_28], %37 {strides = array<i32>} : memref<1x32x32xbf16, #tpu.memory_space<vmem>>, vector<1x32x32xbf16>,
    return
  }
  func.func @transform_0(%arg0: i32, %arg1: i32) -> (i32, i32, i32) {
    %c0_i32 = arith.constant 0 : i32
    %c0_i32_0 = arith.constant 0 : i32
    return %arg0, %arg1, %c0_i32 : i32, i32, i32
  }
  func.func @transform_1(%arg0: i32, %arg1: i32) -> (i32, i32, i32) {
    %c0_i32 = arith.constant 0 : i32
    %c0_i32_0 = arith.constant 0 : i32
    return %arg0, %arg1, %c0_i32 : i32, i32, i32
  }
  func.func @transform_2(%arg0: i32, %arg1: i32) -> (i32, i32, i32) {
    %c0_i32 = arith.constant 0 : i32
    %c0_i32_0 = arith.constant 0 : i32
    return %arg0, %arg1, %c0_i32 : i32, i32, i32
  }
  func.func @transform_3(%arg0: i32, %arg1: i32) -> (i32, i32) {
    %c0_i32 = arith.constant 0 : i32
    %c0_i32_0 = arith.constant 0 : i32
    %c0_i32_1 = arith.constant 0 : i32
    return %c0_i32, %c0_i32_0 : i32, i32
  }
  func.func @transform_4(%arg0: i32, %arg1: i32) -> (i32, i32) {
    %c0_i32 = arith.constant 0 : i32
    %c0_i32_0 = arith.constant 0 : i32
    %c0_i32_1 = arith.constant 0 : i32
    return %c0_i32, %c0_i32_0 : i32, i32
  }
  func.func @transform_5(%arg0: i32, %arg1: i32) -> (i32, i32) {
    %c0_i32 = arith.constant 0 : i32
    %c0_i32_0 = arith.constant 0 : i32
    %c0_i32_1 = arith.constant 0 : i32
    return %c0_i32, %c0_i32_0 : i32, i32
  }
  func.func @transform_6(%arg0: i32, %arg1: i32) -> (i32, i32) {
    %c0_i32 = arith.constant 0 : i32
    %c0_i32_0 = arith.constant 0 : i32
    %c0_i32_1 = arith.constant 0 : i32
    return %c0_i32, %c0_i32_0 : i32, i32
  }
  func.func @transform_7(%arg0: i32, %arg1: i32) -> (i32, i32, i32) {
    %c0_i32 = arith.constant 0 : i32
    %c0_i32_0 = arith.constant 0 : i32
    return %arg0, %arg1, %c0_i32 : i32, i32, i32
  }
  func.func @transform_8(%arg0: i32, %arg1: i32) -> (i32, i32, i32) {
    %c0_i32 = arith.constant 0 : i32
    %c0_i32_0 = arith.constant 0 : i32
    return %arg0, %arg1, %c0_i32 : i32, i32, i32
  }
  func.func @transform_9(%arg0: i32, %arg1: i32) -> (i32, i32, i32) {
    %c0_i32 = arith.constant 0 : i32
    %c0_i32_0 = arith.constant 0 : i32
    return %arg0, %arg1, %c0_i32 : i32, i32, i32
  }
}

</mosaic_0001>

<bundles_post_ra>
// kernel: tpu_custom_call.1
= control target key start
LH: loop header
LB: loop body
LE: loop exit
PB: predicated region body
PF: predicated region fallthrough
CT: control target
= control target key end

     0   :  { %s1651_s0 = inlined_call_operand.vmem [shape: bf16[2,32,32], index: 0, kind: input, shape index: {}]   ;;  %s1652_s1 = inlined_call_operand.vmem [shape: bf16[2,32,32], index: 1, kind: input, shape index: {}]   ;;  %s1653_s2 = inlined_call_operand.vmem [shape: f32[2,32,1], index: 2, kind: input, shape index: {}]   ;;  %s1654_s3 = inlined_call_operand.hbm [shape: bf16[32,64], index: 3, kind: input, shape index: {}]   ;;  %s1655_s4 = inlined_call_operand.vmem [shape: f32[1,64], index: 4, kind: input, shape index: {}]   ;;  %s1656_s5 = inlined_call_operand.hbm [shape: bf16[32,32], index: 5, kind: input, shape index: {}]   ;;  %s1657_s6 = inlined_call_operand.vmem [shape: f32[1,32], index: 6, kind: input, shape index: {}]   ;;  %s1658_s7 = inlined_call_operand.hbm [shape: bf16[2,32,32], index: 7, kind: output, shape index: {0}]   ;;  %s1659_s8 = inlined_call_operand.hbm [shape: bf16[2,32,32], index: 8, kind: output, shape index: {1}]   ;;  %s1660_s9 = inlined_call_operand.hbm [shape: bf16[2,32,32], index: 9, kind: output, shape index: {2}]  }
   0x1   :  { %1665 = sst [smem:[#allocation18_spill]] %s1651_s0 }
   0x2   :  { %1666 = sst [smem:[#allocation19_spill]] %s1652_s1 }
   0x3   :  { %1667 = sst [smem:[#allocation20_spill]] %s1653_s2 }
   0x4   :  { %15 = vsyncpa [#allocation3], 0 }
   0x5   :  { %16 = vsyncpa [#allocation6], 0 }
   0x6   :  { %17 = vsyncpa [#allocation4], 0 }
   0x7   :  { %19 = vsyncpa [#allocation4 + $0x1], 0 }
   0x8   :  { %20 = vsyncpa [#allocation9], 0 }
   0x9   :  { %22 = vsyncpa [#allocation9 + $0x1], 0  ;;  %s1410_s30 = smov 0   ;;  %s1412_s10 = smov 0  }
   0xa   :  { %s1414_s11 = smov 0   ;;  %s1416_s12 = smov 0  }
   0xb   :  { %s1418_s13 = smov 0   ;;  %s1420_s14 = smov 0  }
   0xc LB: > { %1668 = sst [smem:[#allocation15_spill]] %s1346_s13  ;;  %s1441_s15 = sadd.s32 4294967295, %s1350_s14   ;;  %s1350_s14 = sphi %s1420_s14, %s28_s14   ;;  %s1346_s13 = sphi %s1418_s13, %s1681_s13   ;;  %s1342_s12 = sphi %s1416_s12, %s1680_s12   ;;  %s1338_s11 = sphi %s1414_s11, %s1684_s11   ;;  %s1334_s10 = sphi %s1412_s10, %s1683_s10   ;;  %s1330_s30 = sphi %s1410_s30, %s1682_s30  }
   0xd   : > { %s1661_s16 = sadd.s32 4294967294, %s1350_s14   ;;  %s40_s17 = sadd.s32 1, %s1346_s13 }
   0xe   : > { %s217_s18 = sadd.s32 1, %s1338_s11  ;;  %p42_p0 = scmp.ge.s32.totalorder %s40_s17, 2 }
   0xf   : > { %p227_p1 = scmp.ne.s32.totalorder %s1338_s11, %s1334_s10  ;;  %p228_p2 = scmp.eq.s32.totalorder %s1441_s15, 1 }
  0x10   : > { %p233_p3 = scmp.ne.s32.totalorder %s1334_s10, %s1330_s30  ;;  %s1686_s17 = smov (%p42_p0, %s40_s17), 0 }
  0x11   : > { %1669 = sst [smem:[#allocation16_spill]] %s1686_s17  ;;  %p1453_p4 = por %p228_p2, %p227_p1 }
  0x12   : > { %p234_p5 = scmp.eq.s32.totalorder %s1661_s16, 1  ;;  %s212_s20 = ssub.s32 %s1346_s13, %s1686_s17 }
  0x13   : > { %p967_p6 = scmp.ge.s32.totalorder %s1350_s14, 1  ;;  %p215_p7 = scmp.eq.s32.totalorder %s212_s20, 0 }
  0x14   : > { %p1462_p8 = por %p234_p5, %p233_p3  ;;  %p297_p9 = scmp.lt.s32.totalorder %s1350_s14, 3 }
  0x15   : > { %s1468_s22 = scalar_select %p215_p7, %s1338_s11, %s217_s18  }
  0x16   : > { %p1470_p10 = pnand %p967_p6, %p297_p9  ;;  %p1079_p11 = scmp.eq.s32.totalorder %s1441_s15, 0 }
  0x17   : > { %1672 = sst [smem:[#allocation17_spill]] %s1468_s22  ;;  %s308_s26 = sshll.u32 %s1654_s3, 4  ;;  %s309_s26 = int_to_ptr.hbm [resolvable:$true] %s308_s26 }
  0x18   : > { %p1062_p12 = pneg %p1470_p10  ;;  %s1352_s27 = smov [#allocation2]  }
  0x19   : > { %s310_s28 = sshll.u32 %s1352_s27, 4  ;;  %s325_s20 = sshll.u32 %s1656_s5, 4  ;;  %s311_s28 = int_to_ptr.vmem [resolvable:$true] %s310_s28  ;;  %s326_s20 = int_to_ptr.hbm [resolvable:$true] %s325_s20 }
  0x1a   : > { %p1063_p13 = pnand %p1079_p11, %p1062_p12  ;;  %s1353_s16 = smov 64  }
  0x1b   : > { %s1354_s17 = smov 4   ;;  %s1355_s13 = smov [#allocation5]  }
  0x1c   : > { %1065 = dma.hbm_to_vmem [thread:$0]  (!%p1063_p13), %s309_s26, 256, %s311_s28, [#allocation3], %s1353_s16, %s1353_s16, %s1354_s17  }
  0x1d   : > { %s327_s22 = sshll.u32 %s1355_s13, 4  ;;  %385 = sbr.rel (%p1470_p10) target bundleno = 308 (0x134), region = 48  ;;  %s328_s22 = int_to_ptr.vmem [resolvable:$true] %s327_s22 }
  0x1e   : > { %1068 = dma.hbm_to_vmem [thread:$0]  (!%p1063_p13), %s326_s20, 256, %s328_s22, [#allocation6], %s1353_s16, %s1353_s16, %s1354_s17  }
  0x22   : > { %1313 = dma.done.wait (%p1079_p11), [#allocation3], 256  }
  0x23   : > { %1315 = vsyncadd (%p1079_p11), [#allocation3], 4294967040 }
  0x24   : > { %1317 = dma.done.wait (%p1079_p11), [#allocation6], 256  }
  0x25   : > { %1319 = vsyncadd (%p1079_p11), [#allocation6], 4294967040  ;;  %p460_p0 = scmp.lt.s32.totalorder %s1342_s12, 1  ;;  %v1356_v0 = vmov 0   ;;  %s1674_s2 = sld [smem:[#allocation20_spill]]  ;;  %v1038_v1 = vld [vmem:[#allocation2 + $0x8] sm:$0xff] }
  0x26   : > { %1141 = vset.pattern.permute.xlu1 %v1356_v0  ;;  %1140 = vset.pattern.permute.xlu0 %v1356_v0  ;;  %s1675_s0 = sld [smem:[#allocation18_spill]]  ;;  %v1040_v2 = vld [vmem:[#allocation5 + $0x8] sm:$0xff]  ;;  %v1037_v3 = vld [vmem:[#allocation2] sm:$0xff]  ;;  %v1039_v5 = vld [vmem:[#allocation5] sm:$0xff]  ;;  %vm531_vm0 = vcmask 261120   ;;  %s1664_s22 = sand.u32 1, %s1334_s10  }
  0x27   : > { %s461_s13 = scalar_select %p460_p0, %s1342_s12, 1  ;;  %1044 = vmatpush.bf16.msra.mxu2 %v1038_v1  ;;  %544 = vmatpush.bf16.msra.mxu0 %v1038_v1  ;;  %v1143_v21 = vld [vmem:[%s1657_s6] ss:$0 sm:$0xff]  ;;  %vm628_vm1 = vcmask 257024  }
  0x28   : > { %1046 = vmatpush.bf16.msra.mxu3 %v1040_v2  ;;  %599 = vmatpush.bf16.msra.mxu1 %v1040_v2  ;;  %s1676_s1 = sld [smem:[#allocation19_spill]]  ;;  %v1142_v22 = vld [vmem:[%s1655_s4] ss:$0 sm:$0xff]  ;;  %s1515_s23 = sshll.u32 %s1664_s22, 4 }
  0x29   : > { %s1032_s16 = sshll.u32 %s461_s13, 5  ;;  %s1030_s17 = sshll.u32 %s461_s13, 4 }
  0x2a   : > { %s1519_s25 = scalar_lea.vmem [#allocation7], %s1515_s23  ;;  %s1524_s26 = scalar_lea.vmem [#allocation8], %s1515_s23 }
  0x2b   : > { %s487_s24 = scalar_lea.vmem %s1674_s2, %s1032_s16  ;;  %1045 = vmatpush.bf16.msra.mxu2 %v1037_v3  ;;  %545 = vmatpush.bf16.msra.mxu0 %v1037_v3  ;;  %s718_s22 = sshll.u32 %s1519_s25, 4  ;;  %s1560_s22 = int_to_ptr.vmem [resolvable:$true] %s718_s22 }
  0x2c   : > { %s467_s27 = scalar_lea.vmem %s1675_s0, %s1030_s17  ;;  %v614_v4 = vld [vmem:[%s487_s24 + $0x10] sm:$0xff]  ;;  %v612_v7 = vld [vmem:[%s487_s24] sm:$0xff]  ;;  %v615_v12 = vld [vmem:[%s487_s24 + $0x18] sm:$0xff]  ;;  %1047 = vmatpush.bf16.msra.mxu3 %v1039_v5  ;;  %600 = vmatpush.bf16.msra.mxu1 %v1039_v5 }
  0x2d   : > { %v618_v6 = vsub.f32 1.0, %v614_v4  ;;  %v1034_v8 = vld [vmem:[%s467_s27 + $0x8] sm:$0xff]  ;;  %v1033_v9 = vld [vmem:[%s467_s27] sm:$0xff]  ;;  %v616_v10 = vsub.f32 1.0, %v612_v7  ;;  %v619_v17 = vsub.f32 1.0, %v615_v12  ;;  %s1530_s27 = sshll.u32 %s1342_s12, 4 }
  0x2e   : > { %s477_s18 = scalar_lea.vmem %s1676_s1, %s1030_s17  ;;  %v613_v13 = vld [vmem:[%s487_s24 + $0x8] sm:$0xff]  ;;  %1000 = vmatmul.msk.bf16.vlgmr.msra.gmra.mxu2 %vm531_vm0, %v1034_v8  ;;  %999 = vmatmul.msk.bf16.vlgmr.msra.gmra.mxu0 %vm531_vm0, %v1033_v9  ;;  %s1357_s24 = smov 96  }
  0x2f   : > { %v659_v11 = vmul.f32 0.35355338, %v618_v6  ;;  %v1036_v14 = vld [vmem:[%s477_s18 + $0x8] sm:$0xff]  ;;  %v1035_v15 = vld [vmem:[%s477_s18] sm:$0xff]  ;;  %v657_v16 = vmul.f32 0.35355338, %v616_v10  ;;  %s736_s12 = scalar_lea.hbm %s1659_s8, %s1530_s27  ;;  %s717_s16 = scalar_lea.hbm %s1658_s7, %s1530_s27 }
  0x30   : > { %v617_v18 = vsub.f32 1.0, %v613_v13  ;;  %1018 = vmatmul.msk.bf16.vlgmr.msra.gmra.mxu3 %vm531_vm0, %v1036_v14  ;;  %1017 = vmatmul.msk.bf16.vlgmr.msra.gmra.mxu1 %vm531_vm0, %v1035_v15  ;;  %v660_v19 = vmul.f32 0.35355338, %v619_v17  ;;  %s737_s18 = sshll.u32 %s1524_s26, 4  ;;  %s698_s17 = sand.u32 1, %s1441_s15   ;;  %s1554_s18 = int_to_ptr.vmem [resolvable:$true] %s737_s18 }
  0x31   : > { %673 = vperm.xlu1 %1141, %v659_v11   ;;  %663 = vperm.xlu0 %1140, %v657_v16   ;;  %s1552_s28 = sshll.u32 %s736_s12, 4  ;;  %s1556_s29 = sshll.u32 %s717_s16, 4  ;;  %s740_s28 = int_to_ptr.hbm [resolvable:$true] %s1552_s28  ;;  %s721_s29 = int_to_ptr.hbm [resolvable:$true] %s1556_s29 }
  0x32   : > { %v658_v20 = vmul.f32 0.35355338, %v617_v18  ;;  %s1567_s15 = scalar_lea.sflag [#allocation9], %s698_s17  ;;  %s1218_s12 = sshra.s32 %s740_s28, 4  ;;  %s1219_s12 = int_to_ptr.hbm [resolvable:$true] %s1218_s12 }
  0x33   : > { %s1220_s20 = scalar_lea.hbm %s1219_s12, 16  ;;  %s1224_s16 = scalar_lea.hbm %s1659_s8, 32 }
  0x34   : > { %p1221_p1 = scmp.ne.s32.totalorder %s1219_s12, %s1220_s20  ;;  %p1225_p5 = scmp.lt.s32.totalorder %s1219_s12, %s1659_s8 }
  0x35   : > { %p1226_p6 = scmp.lt.s32.totalorder %s1224_s16, %s1220_s20 }
  0x36   : > { %p1222_p2 = pnand %p1221_p1, %p1453_p4 }
  0x37   : > { %p1227_p7 = por %p1226_p6, %p1225_p5 }
  0x38   : > { %p1223_p3 = pneg %p1222_p2 }
  0x39   : > { %678 = vperm.xlu1 %1141, %v660_v19   ;;  %668 = vperm.xlu0 %1140, %v658_v20  }
  0x3a   : > { %p1228_p9 = pnand %p1227_p7, %p1223_p3 }
  0xa3   : > { %v664_v23 = vpop.permute.xlu0 %663  ;;  %v674_v32 = vpop.permute.xlu1 %673 }
  0xab   : > { %v547_v24 = vpop.f32.mrf.mxu0  ;;  %v669_v43 = vpop.permute.xlu0 %668 }
  0xac   : > { %v548_v25 = vadd.f32 %v1142_v22, %v547_v24  ;;  %v679_v56 = vpop.permute.xlu1 %678 }
  0xad   : > { %v602_v26 = vpop.f32.mrf.mxu1 }
  0xae   : > { %v603_v27 = vadd.f32 %v1143_v21, %v602_v26  ;;  %v620_v28 = vmul.f32 0.35355338, %v548_v25  ;;  %v633_v29 = vpack.c.bf16 %v548_v25, %v548_v25 }
  0xb0   : > { %v681_v30 = vmul.f32 %v664_v23, %v603_v27  ;;  %v624_v31 = vpack.c.bf16 %v620_v28, %v620_v28  ;;  %641 = vrot.lane.b32.xlu2 %v633_v29, %s1357_s24 }
  0xb1   : > { %v552_v33 = vpop.f32.mrf.mxu2 }
  0xb2   : > { %v685_v34 = vpack.c.bf16 %v681_v30, %v681_v30  ;;  %v553_v35 = vadd.f32 %v1142_v22, %v552_v33  ;;  %629 = vst.msk [vmem:[%s1519_s25] sm:$0xf] %vm628_vm1, %v624_v31 }
  0xb3   : > { %v607_v36 = vpop.f32.mrf.mxu3  ;;  %v549_v37 = vpop.f32.mrf.mxu0 }
  0xb4   : > { %v608_v38 = vadd.f32 %v1143_v21, %v607_v36  ;;  %689 = vst.msk [vmem:[%s1524_s26] sm:$0xf] %vm628_vm1, %v685_v34  ;;  %v622_v39 = vmul.f32 0.35355338, %v553_v35  ;;  %v635_v40 = vpack.c.bf16 %v553_v35, %v553_v35  ;;  %v550_v41 = vadd.f32 %v1142_v22, %v549_v37 }
  0xb5   : > { %v604_v42 = vpop.f32.mrf.mxu1 }
  0xb6   : > { %v683_v44 = vmul.f32 %v674_v32, %v608_v38  ;;  %v605_v45 = vadd.f32 %v1143_v21, %v604_v42  ;;  %v626_v46 = vpack.c.bf16 %v622_v39, %v622_v39  ;;  %645 = vrot.lane.b32.xlu0 %v635_v40, %s1357_s24  ;;  %v621_v47 = vmul.f32 0.35355338, %v550_v41 }
  0xb7   : > { %v634_v48 = vpack.c.bf16 %v550_v41, %v550_v41 }
  0xb8   : > { %v687_v49 = vpack.c.bf16 %v683_v44, %v683_v44  ;;  %v682_v50 = vmul.f32 %v669_v43, %v605_v45  ;;  %631 = vst.msk [vmem:[%s1519_s25 + $0x8] sm:$0xf] %vm628_vm1, %v626_v46  ;;  %v625_v51 = vpack.c.bf16 %v621_v47, %v621_v47 }
  0xb9   : > { %643 = vrot.lane.b32.xlu2 %v634_v48, %s1357_s24  ;;  %v554_v52 = vpop.f32.mrf.mxu2 }
  0xba   : > { %691 = vst.msk [vmem:[%s1524_s26 + $0x8] sm:$0xf] %vm628_vm1, %v687_v49  ;;  %v686_v53 = vpack.c.bf16 %v682_v50, %v682_v50  ;;  %v555_v54 = vadd.f32 %v1142_v22, %v554_v52 }
  0xbb   : > { %630 = vst.msk [vmem:[%s1519_s25 + $0x4] sm:$0xf] %vm628_vm1, %v625_v51  ;;  %v609_v55 = vpop.f32.mrf.mxu3 }
  0xbc   : > { %v610_v57 = vadd.f32 %v1143_v21, %v609_v55  ;;  %690 = vst.msk [vmem:[%s1524_s26 + $0x4] sm:$0xf] %vm628_vm1, %v686_v53  ;;  %v623_v58 = vmul.f32 0.35355338, %v555_v54  ;;  %v636_v59 = vpack.c.bf16 %v555_v54, %v555_v54 }
  0xbe   : > { %v684_v60 = vmul.f32 %v679_v56, %v610_v57  ;;  %v627_v61 = vpack.c.bf16 %v623_v58, %v623_v58  ;;  %647 = vrot.lane.b32.xlu1 %v636_v59, %s1357_s24 }
  0xc0   : > { %v688_v62 = vpack.c.bf16 %v684_v60, %v684_v60  ;;  %632 = vst.msk [vmem:[%s1519_s25 + $0xc] sm:$0xf] %vm628_vm1, %v627_v61 }
  0xc2   : > { %692 = vst.msk [vmem:[%s1524_s26 + $0xc] sm:$0xf] %vm628_vm1, %v688_v62 }
  0xc3   : > { %1231 = shalt.err (!%p1228_p9)
}
  0xc4   : > { %s1358_s25 = smov 64   ;;  %s1359_s26 = smov 4  }
  0xc5   : > { %1057 = dma.vmem_to_hbm [thread:$0]  (%p1453_p4), %s1554_s18, 256, %s740_s28, %s1567_s15, %s1358_s25, %s1358_s25, %s1359_s26  }
  0xc6   : > { %s1677_s17 = sand.u32 1, %s1334_s10   ;;  %s1246_s1 = sshra.s32 %s721_s29, 4  ;;  %s1247_s1 = int_to_ptr.hbm [resolvable:$true] %s1246_s1 }
  0xc7   : > { %s694_s0 = scalar_lea.sflag [#allocation4], %s1677_s17  ;;  %s1248_s12 = scalar_lea.hbm %s1247_s1, 16 }
  0xc8   : > { %p1249_p10 = scmp.ne.s32.totalorder %s1247_s1, %s1248_s12  ;;  %s1252_s24 = scalar_lea.hbm %s1658_s7, 32 }
  0xc9   : > { %p1253_p13 = scmp.lt.s32.totalorder %s1247_s1, %s1658_s7  ;;  %p1254_p0 = scmp.lt.s32.totalorder %s1252_s24, %s1248_s12 }
  0xca   : > { %p1250_p11 = pnand %p1249_p10, %p1453_p4 }
  0xcb   : > { %p1255_p1 = por %p1254_p0, %p1253_p13 }
  0xcc   : > { %p1251_p12 = pneg %p1250_p11 }
  0xce   : > { %p1256_p2 = pnand %p1255_p1, %p1251_p12 }
  0xd0   : > { %1259 = shalt.err (!%p1256_p2)
}
  0xd1   : > { %1056 = dma.vmem_to_hbm [thread:$0]  (%p1453_p4), %s1560_s22, 256, %s721_s29, %s694_s0, %s1358_s25, %s1358_s25, %s1359_s26  }
  0xd2   : > { %s458_s18 = scalar_lea.vmem [#allocation10], %s1515_s23  ;;  %s755_s17 = scalar_lea.hbm %s1660_s9, %s1530_s27 }
  0xd3   : > { %s756_s1 = sshll.u32 %s458_s18, 4  ;;  %s758_s12 = sshll.u32 %s755_s17, 4  ;;  %s757_s1 = int_to_ptr.vmem [resolvable:$true] %s756_s1  ;;  %s759_s12 = int_to_ptr.hbm [resolvable:$true] %s758_s12 }
  0xd4   : > { %s1274_s22 = sshra.s32 %s759_s12, 4  ;;  %s1280_s20 = scalar_lea.hbm %s1660_s9, 32  ;;  %s1275_s22 = int_to_ptr.hbm [resolvable:$true] %s1274_s22 }
  0xd5   : > { %s1276_s23 = scalar_lea.hbm %s1275_s22, 16  ;;  %p1281_p7 = scmp.lt.s32.totalorder %s1275_s22, %s1660_s9 }
  0xd6   : > { %p1277_p3 = scmp.ne.s32.totalorder %s1275_s22, %s1276_s23  ;;  %p1282_p9 = scmp.lt.s32.totalorder %s1280_s20, %s1276_s23 }
  0xd8   : > { %p1278_p5 = pnand %p1277_p3, %p1453_p4  ;;  %p1283_p10 = por %p1282_p9, %p1281_p7 }
  0xda   : > { %p1279_p6 = pneg %p1278_p5 }
  0xdc   : > { %p1284_p11 = pnand %p1283_p10, %p1279_p6 }
 0x10a   : > { %v642_v63 = vpop.permute.xlu2 %641 }
 0x10b   : > { %653 = vst.msk [vmem:[%s458_s18] sm:$0xf] %vm628_vm1, %v642_v63 }
 0x113   : > { %v644_v0 = vpop.permute.xlu2 %643 }
 0x114   : > { %654 = vst.msk [vmem:[%s458_s18 + $0x4] sm:$0xf] %vm628_vm1, %v644_v0 }
 0x128   : > { %v646_v1 = vpop.permute.xlu0 %645 }
 0x129   : > { %655 = vst.msk [vmem:[%s458_s18 + $0x8] sm:$0xf] %vm628_vm1, %v646_v1 }
 0x130   : > { %v648_v2 = vpop.permute.xlu1 %647 }
 0x131   : > { %656 = vst.msk [vmem:[%s458_s18 + $0xc] sm:$0xf] %vm628_vm1, %v648_v2 }
 0x132   : > { %1287 = shalt.err (!%p1284_p11)
}
 0x133   : > { %1058 = dma.vmem_to_hbm [thread:$0]  (%p1453_p4), %s757_s1, 256, %s759_s12, %s1567_s15, %s1358_s25, %s1358_s25, %s1359_s26  }
 0x134 PF: > { %p1083_p12 = scmp.ge.s32.totalorder %s1350_s14, 2  ;;  %s773_s24 = sand.u32 1, %s1330_s30  }
 0x135   : > { %s774_s16 = scalar_lea.sflag [#allocation4], %s773_s24 }
 0x136   : > { %p1070_p13 = pnand %p1083_p12, %p1462_p8 }
 0x138   : > { %p1071_p0 = pneg %p1070_p13 }
 0x13a   : > { %1321 = dma.done.wait (%p1071_p0), %s774_s16, 256  }
 0x13b   : > { %1323 = vsyncadd (%p1071_p0), %s774_s16, 4294967040  ;;  %s1678_s18 = sadd.s32 4294967294, %s1350_s14  }
 0x13c   : > { %s783_s19 = sand.u32 1, %s1678_s18  }
 0x13d   : > { %s784_s2 = scalar_lea.sflag [#allocation9], %s783_s19 }
 0x13e   : > { %1325 = dma.done.wait (%p1071_p0), %s784_s2, 512  }
 0x13f   : > { %1327 = vsyncadd (%p1071_p0), %s784_s2, 4294966784  ;;  %s28_s14 = sadd.s32 1, %s1350_s14   ;;  %s1679_s15 = sld [smem:[#allocation17_spill]] }
 0x140   : > { %p25_p4 = scmp.ge.s32.totalorder %s28_s14, 4   ;;  %s1680_s12 = sld [smem:[#allocation15_spill]] }
 0x141   : > { %s1681_s13 = sld [smem:[#allocation16_spill]]  ;;  %s1682_s30 = smov %s1334_s10 }
 0x142   : > { %s1683_s10 = smov %s1338_s11  ;;  %27 = sbr.rel (!%p25_p4) target bundleno = 12 (0xc), region = 130 }
 0x145   : > { %s1684_s11 = smov %s1679_s15 }
 0x147   :  { %800 = vsyncpa [#allocation3], 1 }
 0x148   :  { %802 = vsyncpa [#allocation3 + $0x1], 1 }
 0x149   :  { %803 = vsyncpa [#allocation6], 1 }
 0x14a   :  { %804 = vsyncpa [#allocation4], 1 }
 0x14b   :  { %806 = vsyncpa [#allocation4 + $0x1], 1 }
 0x14c   :  { %807 = vsyncpa [#allocation9], 1 }
 0x14d   :  { %809 = vsyncpa [#allocation9 + $0x1], 1 }

</bundles_post_ra>
